<compile_context>
chip_gen: v7x
topology: tpu7x:2x2x1
jax: 0.10.0
libtpu: 0.0.40
codegen_flags: <defaults>
</compile_context>

<pallas_src>
import functools
import math

import jax
import jax.numpy as jnp
from jax import lax
from jax.experimental import pallas as pl
from jax.experimental.pallas import tpu as pltpu


def _round_up(v, m):
    return -(-v // m) * m


def _vmem_budget():
    """Per-core VMEM budget with headroom (v7x: 64 MiB/TC vs 128 MiB v5e/v6e)."""
    try:
        cap = getattr(pltpu.get_tpu_info(), "vmem_capacity_bytes", None)
        if cap:
            return int(cap) * 3 // 4
    except Exception:
        pass
    return 48 * 1024 * 1024  # v7x-safe fallback


# --------------------------------- kernel ------------------------------------

def _conv_bn_relu_kernel(x_ref, w_ref, scale_ref, shift_ref, o_ref, *scratch,
                         ks, stride_h, h_out, w_out, merge_taps):
    """Fused Conv2d(stride=(s,1), 'same') + BN(eval) + ReLU, one sample/step.

    x_ref    : (Hp, Wp, C_in)    spatially pre-padded, channels-last sample
    w_ref    : (ks*ks*C_in, C_out_p) if merge_taps else (ks*ks, C_in, C_out_p)
    scale_ref: (1, C_out_p)      folded BN scale (zero on padded channels)
    shift_ref: (1, C_out_p)      folded conv-bias + BN shift
    o_ref    : (H_out*W_out, C_out_p)  lane-dense output slab
    scratch  : (acc_ref,) f32 accumulator (per-tap path only)
    """
    c_in = x_ref.shape[-1]
    hw = h_out * w_out

    def tap_lhs(dy, dx):
        # Rows stride_h apart (the conv's H stride), contiguous cols, all C_in.
        patch = x_ref[pl.ds(dy, h_out, stride=stride_h), pl.ds(dx, w_out), :]
        # Leading-dim merge; free relayout when w_out % 8 == 0.
        return patch.reshape(hw, c_in)

    if merge_taps:
        # Small C_in underfills the MXU contraction depth -> im2col in
        # registers and a single contraction with K = ks*ks*C_in.
        lhs = jnp.concatenate(
            [tap_lhs(dy, dx) for dy in range(ks) for dx in range(ks)], axis=-1)
        acc = jnp.dot(lhs, w_ref[...], preferred_element_type=jnp.float32)
    else:
        # C_in already fills the systolic depth: tap-wise matmuls with zero
        # data replication, accumulated in a f32 VMEM scratch ref.
        acc_ref, = scratch
        acc_ref[...] = jnp.zeros_like(acc_ref)
        for dy in range(ks):
            for dx in range(ks):
                acc_ref[...] += jnp.dot(tap_lhs(dy, dx), w_ref[dy * ks + dx],
                                        preferred_element_type=jnp.float32)
        acc = acc_ref[...]

    # Folded (inference) BatchNorm + ReLU; f32 epilogue, single cast on store.
    y = jnp.maximum(acc * scale_ref[...] + shift_ref[...], 0.0)
    o_ref[...] = y.astype(o_ref.dtype)


# -------------------------------- wrapper ------------------------------------

def conv_compress_h(x, weight, bias, bn_gamma, bn_beta, bn_mean, bn_var, *,
                    eps=1e-5, stride=(2, 1)):
    """Forward pass of ConvCompressH (NCHW in / NCHW out), inference-mode BN."""
    n, c_in, h, w = x.shape
    c_out, c_in_w, ks, ks_w = weight.shape
    assert c_in_w == c_in and ks == ks_w and ks % 2 == 1
    sh, sw = stride
    assert sw == 1, "ConvCompressH only strides along H"

    pad = ks // 2
    h_out = (h + 2 * pad - ks) // sh + 1
    w_out = (w + 2 * pad - ks) // sw + 1          # == w for padding = ks // 2
    hp, wp = h + 2 * pad, w + 2 * pad
    hw = h_out * w_out

    # Lane-dense output channels: pad C_out up to a multiple of 128 so every
    # output store is an unmasked full-lane vst; wrapper slices it back off.
    c_out_p = _round_up(c_out, 128)

    # Fold conv bias + inference BatchNorm into per-channel scale / shift.
    scale = (bn_gamma / jnp.sqrt(bn_var + eps)).astype(jnp.float32)
    shift = (bn_beta + (bias - bn_mean) * scale).astype(jnp.float32)
    scale = jnp.pad(scale, (0, c_out_p - c_out)).reshape(1, c_out_p)
    shift = jnp.pad(shift, (0, c_out_p - c_out)).reshape(1, c_out_p)

    # (C_out, C_in, ks, ks) -> (ks, ks, C_in, C_out_p), tap index dy*ks + dx.
    w_kkio = jnp.pad(jnp.transpose(weight, (2, 3, 1, 0)).astype(jnp.float32),
                     ((0, 0), (0, 0), (0, 0), (0, c_out_p - c_out)))

    merge_taps = c_in < 128
    if merge_taps:
        w_arg = w_kkio.reshape(ks * ks * c_in, c_out_p)
        w_spec = pl.BlockSpec((ks * ks * c_in, c_out_p), lambda b: (0, 0))
        scratch_shapes = []
    else:
        w_arg = w_kkio.reshape(ks * ks, c_in, c_out_p)
        w_spec = pl.BlockSpec((ks * ks, c_in, c_out_p), lambda b: (0, 0, 0))
        scratch_shapes = [pltpu.VMEM((hw, c_out_p), jnp.float32)]

    # Channels-last + spatial zero padding once in the wrapper (fuses with the
    # unavoidable NCHW->NHWC relayout) -> no padded scratch, no memset, and no
    # sublane-misaligned interior copy inside the kernel.
    x_pad = jnp.pad(jnp.transpose(x, (0, 2, 3, 1)),
                    ((0, 0), (pad, pad), (pad, pad), (0, 0)))

    # VMEM accounting (double-buffered in/out blocks + weights + scratch).
    itemsize = jnp.dtype(x.dtype).itemsize
    in_block = hp * wp * c_in * itemsize
    out_block = hw * c_out_p * itemsize
    fixed = w_arg.size * 4 + 2 * c_out_p * 4
    scratch_bytes = (hw * ks * ks * c_in * 4) if merge_taps else (hw * c_out_p * 4)
    needed = 2 * (in_block + out_block) + fixed + scratch_bytes
    budget = _vmem_budget()
    if needed > budget:
        # TODO(synk): add an H_out row-tile grid axis (halo rows via manual
        # DMA) for feature maps whose per-sample footprint exceeds VMEM.
        raise ValueError(
            f"per-sample VMEM footprint {needed} B exceeds budget {budget} B")
    vmem_limit = int(min(budget, max(2 * needed, 32 * 1024 * 1024)))

    kernel = functools.partial(_conv_bn_relu_kernel, ks=ks, stride_h=sh,
                               h_out=h_out, w_out=w_out, merge_taps=merge_taps)

    out_flat = pl.pallas_call(
        kernel,
        out_shape=jax.ShapeDtypeStruct((n, hw, c_out_p), x.dtype),
        grid=(n,),
        in_specs=[
            pl.BlockSpec((None, hp, wp, c_in), lambda b: (b, 0, 0, 0)),
            w_spec,
            pl.BlockSpec((1, c_out_p), lambda b: (0, 0)),
            pl.BlockSpec((1, c_out_p), lambda b: (0, 0)),
        ],
        out_specs=pl.BlockSpec((None, hw, c_out_p), lambda b: (b, 0, 0)),
        scratch_shapes=scratch_shapes,
        compiler_params=pltpu.CompilerParams(
            dimension_semantics=("parallel",),
            vmem_limit_bytes=vmem_limit),
    )(x_pad, w_arg, scale, shift)

    # Metadata-only reshape, drop channel padding, one layout transpose back.
    out = out_flat.reshape(n, h_out, w_out, c_out_p)[..., :c_out]
    return out.transpose(0, 3, 1, 2)


# ---------------------------- pure-JAX reference ------------------------------

def conv_compress_h_reference(x, weight, bias, bn_gamma, bn_beta, bn_mean,
                              bn_var, *, eps=1e-5, stride=(2, 1)):
    ks = weight.shape[2]
    pad = ks // 2
    y = lax.conv_general_dilated(
        x, weight, window_strides=stride,
        padding=[(pad, pad), (pad, pad)],
        dimension_numbers=('NCHW', 'OIHW', 'NCHW'),
        precision=lax.Precision.HIGHEST)
    y = y + bias[None, :, None, None]
    scale = bn_gamma / jnp.sqrt(bn_var + eps)
    y = (y - bn_mean[None, :, None, None]) * scale[None, :, None, None] \
        + bn_beta[None, :, None, None]
    return jnp.maximum(y, 0.0)


# ----------------------------------- main -------------------------------------

if __name__ == "__main__":
    key = jax.random.PRNGKey(0)
    keys = jax.random.split(key, 7)

    n, in_c, out_c, h, w, ks = 2, 4, 8, 16, 16, 3

    x = jax.random.normal(keys[0], (n, in_c, h, w), dtype=jnp.float32)
    fan_in = in_c * ks * ks
    bound = 1.0 / math.sqrt(fan_in)
    weight = jax.random.uniform(keys[1], (out_c, in_c, ks, ks), jnp.float32,
                                -bound, bound)
    bias = jax.random.uniform(keys[2], (out_c,), jnp.float32, -bound, bound)
    bn_gamma = jax.random.uniform(keys[3], (out_c,), jnp.float32, 0.5, 1.5)
    bn_beta = jax.random.normal(keys[4], (out_c,), jnp.float32) * 0.1
    bn_mean = jax.random.normal(keys[5], (out_c,), jnp.float32) * 0.1
    bn_var = jax.random.uniform(keys[6], (out_c,), jnp.float32, 0.5, 1.5)

    y = jax.block_until_ready(
        conv_compress_h(x, weight, bias, bn_gamma, bn_beta, bn_mean, bn_var))
    assert y.shape == (n, out_c, h // 2, w), y.shape

    y_ref = conv_compress_h_reference(x, weight, bias, bn_gamma, bn_beta,
                                      bn_mean, bn_var)
    # Tolerance chosen for the default (single-pass) MXU precision: with K=36
    # and O(1) activations the expected error is ~1e-3; 2e-2 still catches any
    # structural (tap / stride / BN-fold) mistake.
    if not jnp.allclose(y, y_ref, atol=2e-2, rtol=2e-2):
        err = float(jnp.max(jnp.abs(y - y_ref)))
        raise AssertionError(f"Pallas ConvCompressH mismatch (max abs err = {err})")
    print("KERNEL_OK")
</pallas_src>

<mosaic_0001>
module attributes {stable_mosaic.version = 11 : i64} {
  func.func @_conv_bn_relu_kernel(%arg0: i32, %arg1: memref<1x18x18x4xf32, #tpu.memory_space<vmem>>, %arg2: memref<36x128xf32, #tpu.memory_space<vmem>>, %arg3: memref<1x128xf32, #tpu.memory_space<vmem>>, %arg4: memref<1x128xf32, #tpu.memory_space<vmem>>, %arg5: memref<1x128x128xf32, #tpu.memory_space<vmem>>) attributes {dimension_semantics = [#tpu.dimension_semantics<parallel>], iteration_bounds = array<i64: 2>, scalar_prefetch = 0 : i64, scratch_operands = 0 : i64, tpu.core_type = #tpu.core_type<tc>, window_params = [{transform_indices = @transform_0, window_bounds = array<i64: 1, 18, 18, 4>}, {pipeline_mode = #tpu.pipeline_mode<synchronous>, transform_indices = @transform_1, window_bounds = array<i64: 36, 128>}, {pipeline_mode = #tpu.pipeline_mode<synchronous>, transform_indices = @transform_2, window_bounds = array<i64: 1, 128>}, {pipeline_mode = #tpu.pipeline_mode<synchronous>, transform_indices = @transform_3, window_bounds = array<i64: 1, 128>}, {transform_indices = @transform_4, window_bounds = array<i64: 1, 128, 128>}]} {
    %c0 = arith.constant 0 : index
    %c0_0 = arith.constant 0 : index
    %c0_1 = arith.constant 0 : index
    %c0_2 = arith.constant 0 : index
    %0 = tpu.strided_load %arg1[%c0, %c0_0, %c0_1, %c0_2] {strides = array<i32: 1, 2, 1, 1>} : memref<1x18x18x4xf32, #tpu.memory_space<vmem>>, vector<1x8x16x4xf32>
    %1 = vector.shape_cast %0 : vector<1x8x16x4xf32> to vector<8x16x4xf32>
    %2 = vector.shape_cast %1 : vector<8x16x4xf32> to vector<128x4xf32>
    %c0_3 = arith.constant 0 : index
    %c0_4 = arith.constant 0 : index
    %c1 = arith.constant 1 : index
    %c0_5 = arith.constant 0 : index
    %3 = tpu.strided_load %arg1[%c0_3, %c0_4, %c1, %c0_5] {strides = array<i32: 1, 2, 1, 1>} : memref<1x18x18x4xf32, #tpu.memory_space<vmem>>, vector<1x8x16x4xf32>
    %4 = vector.shape_cast %3 : vector<1x8x16x4xf32> to vector<8x16x4xf32>
    %5 = vector.shape_cast %4 : vector<8x16x4xf32> to vector<128x4xf32>
    %c0_6 = arith.constant 0 : index
    %c0_7 = arith.constant 0 : index
    %c2 = arith.constant 2 : index
    %c0_8 = arith.constant 0 : index
    %6 = tpu.strided_load %arg1[%c0_6, %c0_7, %c2, %c0_8] {strides = array<i32: 1, 2, 1, 1>} : memref<1x18x18x4xf32, #tpu.memory_space<vmem>>, vector<1x8x16x4xf32>
    %7 = vector.shape_cast %6 : vector<1x8x16x4xf32> to vector<8x16x4xf32>
    %8 = vector.shape_cast %7 : vector<8x16x4xf32> to vector<128x4xf32>
    %c0_9 = arith.constant 0 : index
    %c1_10 = arith.constant 1 : index
    %c0_11 = arith.constant 0 : index
    %c0_12 = arith.constant 0 : index
    %9 = tpu.strided_load %arg1[%c0_9, %c1_10, %c0_11, %c0_12] {strides = array<i32: 1, 2, 1, 1>} : memref<1x18x18x4xf32, #tpu.memory_space<vmem>>, vector<1x8x16x4xf32>
    %10 = vector.shape_cast %9 : vector<1x8x16x4xf32> to vector<8x16x4xf32>
    %11 = vector.shape_cast %10 : vector<8x16x4xf32> to vector<128x4xf32>
    %c0_13 = arith.constant 0 : index
    %c1_14 = arith.constant 1 : index
    %c1_15 = arith.constant 1 : index
    %c0_16 = arith.constant 0 : index
    %12 = tpu.strided_load %arg1[%c0_13, %c1_14, %c1_15, %c0_16] {strides = array<i32: 1, 2, 1, 1>} : memref<1x18x18x4xf32, #tpu.memory_space<vmem>>, vector<1x8x16x4xf32>
    %13 = vector.shape_cast %12 : vector<1x8x16x4xf32> to vector<8x16x4xf32>
    %14 = vector.shape_cast %13 : vector<8x16x4xf32> to vector<128x4xf32>
    %c0_17 = arith.constant 0 : index
    %c1_18 = arith.constant 1 : index
    %c2_19 = arith.constant 2 : index
    %c0_20 = arith.constant 0 : index
    %15 = tpu.strided_load %arg1[%c0_17, %c1_18, %c2_19, %c0_20] {strides = array<i32: 1, 2, 1, 1>} : memref<1x18x18x4xf32, #tpu.memory_space<vmem>>, vector<1x8x16x4xf32>
    %16 = vector.shape_cast %15 : vector<1x8x16x4xf32> to vector<8x16x4xf32>
    %17 = vector.shape_cast %16 : vector<8x16x4xf32> to vector<128x4xf32>
    %c0_21 = arith.constant 0 : index
    %c2_22 = arith.constant 2 : index
    %c0_23 = arith.constant 0 : index
    %c0_24 = arith.constant 0 : index
    %18 = tpu.strided_load %arg1[%c0_21, %c2_22, %c0_23, %c0_24] {strides = array<i32: 1, 2, 1, 1>} : memref<1x18x18x4xf32, #tpu.memory_space<vmem>>, vector<1x8x16x4xf32>
    %19 = vector.shape_cast %18 : vector<1x8x16x4xf32> to vector<8x16x4xf32>
    %20 = vector.shape_cast %19 : vector<8x16x4xf32> to vector<128x4xf32>
    %c0_25 = arith.constant 0 : index
    %c2_26 = arith.constant 2 : index
    %c1_27 = arith.constant 1 : index
    %c0_28 = arith.constant 0 : index
    %21 = tpu.strided_load %arg1[%c0_25, %c2_26, %c1_27, %c0_28] {strides = array<i32: 1, 2, 1, 1>} : memref<1x18x18x4xf32, #tpu.memory_space<vmem>>, vector<1x8x16x4xf32>
    %22 = vector.shape_cast %21 : vector<1x8x16x4xf32> to vector<8x16x4xf32>
    %23 = vector.shape_cast %22 : vector<8x16x4xf32> to vector<128x4xf32>
    %c0_29 = arith.constant 0 : index
    %c2_30 = arith.constant 2 : index
    %c2_31 = arith.constant 2 : index
    %c0_32 = arith.constant 0 : index
    %24 = tpu.strided_load %arg1[%c0_29, %c2_30, %c2_31, %c0_32] {strides = array<i32: 1, 2, 1, 1>} : memref<1x18x18x4xf32, #tpu.memory_space<vmem>>, vector<1x8x16x4xf32>
    %25 = vector.shape_cast %24 : vector<1x8x16x4xf32> to vector<8x16x4xf32>
    %26 = vector.shape_cast %25 : vector<8x16x4xf32> to vector<128x4xf32>
    %27 = tpu.concatenate %2, %5, %8, %11, %14, %17, %20, %23, %26 in 1 : vector<128x4xf32>, vector<128x4xf32>, vector<128x4xf32>, vector<128x4xf32>, vector<128x4xf32>, vector<128x4xf32>, vector<128x4xf32>, vector<128x4xf32>, vector<128x4xf32> -> vector<128x36xf32>
    %c0_33 = arith.constant 0 : index
    %c0_34 = arith.constant 0 : index
    %28 = vector.load %arg2[%c0_33, %c0_34] : memref<36x128xf32, #tpu.memory_space<vmem>>, vector<36x128xf32>
    %cst = arith.constant dense<0.000000e+00> : vector<128x128xf32>
    %29 = tpu.matmul %27, %28, %cst {dimension_numbers = #tpu.dot_dimension_numbers<[1], [0], [0], [1], [0, 0, 1, 1], [], []>} : vector<128x36xf32>, vector<36x128xf32>, vector<128x128xf32> -> vector<128x128xf32>
    %c0_35 = arith.constant 0 : index
    %c0_36 = arith.constant 0 : index
    %30 = vector.load %arg3[%c0_35, %c0_36] : memref<1x128xf32, #tpu.memory_space<vmem>>, vector<1x128xf32>
    %31 = vector.broadcast %30 : vector<1x128xf32> to vector<128x128xf32>
    %32 = arith.mulf %29, %31 : vector<128x128xf32>
    %c0_37 = arith.constant 0 : index
    %c0_38 = arith.constant 0 : index
    %33 = vector.load %arg4[%c0_37, %c0_38] : memref<1x128xf32, #tpu.memory_space<vmem>>, vector<1x128xf32>
    %34 = vector.broadcast %33 : vector<1x128xf32> to vector<128x128xf32>
    %35 = arith.addf %32, %34 : vector<128x128xf32>
    %cst_39 = arith.constant 0.000000e+00 : f32
    %36 = vector.broadcast %cst_39 : f32 to vector<128x128xf32>
    %37 = arith.maximumf %35, %36 : vector<128x128xf32>
    %c0_40 = arith.constant 0 : index
    %c0_41 = arith.constant 0 : index
    %c0_42 = arith.constant 0 : index
    %38 = vector.load %arg5[%c0_40, %c0_41, %c0_42] : memref<1x128x128xf32, #tpu.memory_space<vmem>>, vector<1x128x128xf32>
    %39 = vector.shape_cast %38 : vector<1x128x128xf32> to vector<128x128xf32>
    %40 = vector.shape_cast %37 : vector<128x128xf32> to vector<1x128x128xf32>
    tpu.vector_store %arg5[%c0_40, %c0_41, %c0_42], %40 {strides = array<i32>} : memref<1x128x128xf32, #tpu.memory_space<vmem>>, vector<1x128x128xf32>,
    return
  }
  func.func @transform_0(%arg0: i32) -> (i32, i32, i32, i32) {
    %c0_i32 = arith.constant 0 : i32
    %c0_i32_0 = arith.constant 0 : i32
    %c0_i32_1 = arith.constant 0 : i32
    %c0_i32_2 = arith.constant 0 : i32
    return %arg0, %c0_i32, %c0_i32_0, %c0_i32_1 : i32, i32, i32, i32
  }
  func.func @transform_1(%arg0: i32) -> (i32, i32) {
    %c0_i32 = arith.constant 0 : i32
    %c0_i32_0 = arith.constant 0 : i32
    %c0_i32_1 = arith.constant 0 : i32
    return %c0_i32, %c0_i32_0 : i32, i32
  }
  func.func @transform_2(%arg0: i32) -> (i32, i32) {
    %c0_i32 = arith.constant 0 : i32
    %c0_i32_0 = arith.constant 0 : i32
    %c0_i32_1 = arith.constant 0 : i32
    return %c0_i32, %c0_i32_0 : i32, i32
  }
  func.func @transform_3(%arg0: i32) -> (i32, i32) {
    %c0_i32 = arith.constant 0 : i32
    %c0_i32_0 = arith.constant 0 : i32
    %c0_i32_1 = arith.constant 0 : i32
    return %c0_i32, %c0_i32_0 : i32, i32
  }
  func.func @transform_4(%arg0: i32) -> (i32, i32, i32) {
    %c0_i32 = arith.constant 0 : i32
    %c0_i32_0 = arith.constant 0 : i32
    %c0_i32_1 = arith.constant 0 : i32
    return %arg0, %c0_i32, %c0_i32_0 : i32, i32, i32
  }
}

</mosaic_0001>

<bundles_post_ra>
// kernel: tpu_custom_call.1
= control target key start
LH: loop header
LB: loop body
LE: loop exit
PB: predicated region body
PF: predicated region fallthrough
CT: control target
= control target key end

     0   :  { %9 = vsyncpa [#allocation3], 0  ;;  %s2493_s0 = inlined_call_operand.vmem [shape: f32[2,18,18,4], index: 0, kind: input, shape index: {}]   ;;  %s2494_s1 = inlined_call_operand.vmem [shape: f32[36,128], index: 1, kind: input, shape index: {}]   ;;  %s2495_s2 = inlined_call_operand.vmem [shape: f32[1,128], index: 2, kind: input, shape index: {}]   ;;  %s2496_s3 = inlined_call_operand.vmem [shape: f32[1,128], index: 3, kind: input, shape index: {}]   ;;  %s2497_s4 = inlined_call_operand.hbm [shape: f32[2,128,128], index: 4, kind: output, shape index: {}]  }
   0x1   :  { %11 = vsyncpa [#allocation3 + $0x1], 0  ;;  %s1691_s15 = smov 0   ;;  %s1693_s16 = smov 0  }
   0x2   :  { %s1695_s17 = smov 0   ;;  %s1697_s18 = smov 0  }
   0x3 LB: > { %s1712_s19 = sadd.s32 4294967295, %s1654_s18   ;;  %s1347_s20 = sadd.s32 4294967294, %s1654_s18   ;;  %s1654_s18 = sphi %s1697_s18, %s2521_s18   ;;  %s1650_s17 = sphi %s1695_s17, %s2520_s17   ;;  %s1646_s16 = sphi %s1693_s16, %s2519_s16   ;;  %s1642_s15 = sphi %s1691_s15, %s2518_s15  }
   0x4   : > { %s1716_s21 = sadd.s32 1, %s1654_s18   ;;  %s113_s22 = sadd.s32 1, %s1650_s17 }
   0x5   : > { %s110_s23 = ssub.s32 %s1654_s18, %s1716_s21  ;;  %p123_p0 = scmp.ne.s32.totalorder %s1650_s17, %s1646_s16 }
   0x6   : > { %p111_p1 = scmp.eq.s32.totalorder %s110_s23, 0  ;;  %p124_p2 = scmp.eq.s32.totalorder %s1712_s19, 1 }
   0x7   : > { %p129_p3 = scmp.ne.s32.totalorder %s1646_s16, %s1642_s15  ;;  %p130_p4 = scmp.eq.s32.totalorder %s1347_s20, 1 }
   0x8   : > { %s1727_s24 = scalar_select %p111_p1, %s1650_s17, %s113_s22  }
   0x9   : > { %p1729_p5 = por %p124_p2, %p123_p0  ;;  %p1733_p6 = por %p130_p4, %p129_p3 }
   0xa   : > { %p1350_p7 = scmp.ge.s32.totalorder %s1654_s18, 1  ;;  %p165_p8 = scmp.lt.s32.totalorder %s1654_s18, 3 }
   0xc   : > { %p166_p9 = pnand %p1350_p7, %p165_p8 }
   0xe   : > { %169 = sbr.rel (%p166_p9) target bundleno = 631 (0x277), region = 36 }
  0x15   : > { %p191_p10 = scmp.lt.s32.totalorder %s1712_s19, 1  ;;  %s1656_s6 = smov 4   ;;  %v990_v38 = vld [vmem:[%s2494_s1] sm:$0xff]  ;;  %v991_v39 = vld [vmem:[%s2494_s1 + $0x8] sm:$0xff]  ;;  %v992_v41 = vld [vmem:[%s2494_s1 + $0x10] sm:$0xff]  ;;  %vm1044_vm0 = vcmask 1043456  }
  0x16   : > { %s1657_s7 = smov 8   ;;  %s1658_s8 = smov 12   ;;  %v1529_v40 = vpack.c.bf16 %v991_v39, %v990_v38  ;;  %v993_v42 = vld [vmem:[%s2494_s1 + $0x18] sm:$0xff]  ;;  %v994_v44 = vld [vmem:[%s2494_s1 + $0x20] sm:$0xf]  ;;  %vm854_vm1 = vcmask 31744  }
  0x17   : > { %s192_s27 = scalar_select %p191_p10, %s1712_s19, 1  ;;  %v1533_v43 = vpack.c.bf16 %v993_v42, %v992_v41  ;;  %vm871_vm2 = vcmask 64512   ;;  %vm888_vm3 = vcmask 97280   ;;  %vm905_vm4 = vcmask 130048  }
  0x18   : > { %s1659_s9 = smov 16   ;;  %s1660_s10 = smov 20   ;;  %1530 = vmatprep.subr.bf16.mxu0 %v1529_v40  ;;  %1537 = vmatprep.subr.bf16.mxu1 %v1529_v40  ;;  %vm922_vm5 = vcmask 162816   ;;  %vm939_vm6 = vcmask 195584   ;;  %vm956_vm7 = vcmask 228352   ;;  %vm973_vm8 = vcmask 261120  }
  0x19   : > { %s1543_s28 = smul.u32 432, %s192_s27  ;;  %s1661_s11 = smov 24   ;;  %1532 = vmatpush3.bf16.msra.mxu0 %v1529_v40  ;;  %1540 = vmatpush3.bf16.msra.mxu1 %v1529_v40  ;;  %vm995_vm9 = vcmask 293888  }
  0x1a   : > { %s1662_s12 = smov 28   ;;  %1534 = vmatprep.subr.bf16.mxu0 %v1533_v43  ;;  %1538 = vmatprep.subr.bf16.mxu1 %v1533_v43  ;;  %s1663_s30 = smov 32  }
  0x1b   : > { %s1744_s5 = scalar_lea.vmem %s2493_s0, %s1543_s28  ;;  %s1473_s20 = sshll.u32 %s1712_s19, 11 }
  0x1c   : > { %v213_v0 = vld [vmem:[%s1744_s5 + $0x9] sm:$0xff]  ;;  %v212_v1 = vld [vmem:[%s1744_s5 + $0x1] sm:$0xff]  ;;  %v1361_v8 = vld [vmem:[%s1744_s5 + $0xd8] sm:$0xff]  ;;  %s2441_s28 = scalar_lea.hbm %s2497_s4, %s1473_s20 }
  0x1d   : > { %360 = vrot.lane.b32.xlu1 %v213_v0, %s1656_s6  ;;  %358 = vrot.lane.b32.xlu0 %v212_v1, %s1656_s6  ;;  %v1751_v2 = vld [vmem:[%s1744_s5 + $0xc9] sm:$0xff]  ;;  %v1754_v3 = vld [vmem:[%s1744_s5 + $0xc1] sm:$0xff] }
  0x1e   : > { %2506 = vst [vmem:[#allocation5_spill] sm:$0xff] %v1751_v2  ;;  %2507 = vst [vmem:[#allocation6_spill] sm:$0xff] %v1754_v3  ;;  %v1761_v4 = vld [vmem:[%s1744_s5 + $0xc2] sm:$0xff]  ;;  %v1768_v6 = vld [vmem:[%s1744_s5 + $0xca] sm:$0xff]  ;;  %1536 = vmatpush3.bf16.msra.mxu0 %v1533_v43  ;;  %1541 = vmatpush3.bf16.msra.mxu1 %v1533_v43 }
  0x1f   : > { %2508 = vst [vmem:[#allocation7_spill] sm:$0xff] %v1761_v4  ;;  %v228_v5 = vld [vmem:[%s1744_s5 + $0x2] sm:$0xff]  ;;  %2509 = vst [vmem:[#allocation8_spill] sm:$0xff] %v1768_v6  ;;  %v229_v7 = vld [vmem:[%s1744_s5 + $0xa] sm:$0xff]  ;;  %1503 = vmatprep.subr.msk.mxu0 %vm1044_vm0, %v994_v44  ;;  %1539 = vmatprep.subr.msk.mxu1 %vm1044_vm0, %v994_v44 }
  0x20   : > { %v1353_v9 = vld [vmem:[%s1744_s5 + $0x18] sm:$0xff]  ;;  %v1362_v10 = vld [vmem:[%s1744_s5 + $0xe0] sm:$0xff]  ;;  %v1811_v26 = vld [vmem:[%s1744_s5 + $0xf0] sm:$0xff] }
  0x21   : > { %376 = vrot.lane.b32.xlu1 %v1751_v2, %s1656_s6  ;;  %374 = vrot.lane.b32.xlu0 %v1754_v3, %s1656_s6  ;;  %v1354_v11 = vld [vmem:[%s1744_s5 + $0x20] sm:$0xff]  ;;  %v222_v14 = vld [vmem:[%s1744_s5 + $0xf1] sm:$0xff] }
  0x22   : > { %v1377_v12 = vld [vmem:[%s1744_s5 + $0xd9] sm:$0xff]  ;;  %v214_v15 = vld [vmem:[%s1744_s5 + $0x31] sm:$0xff]  ;;  %v1378_v16 = vld [vmem:[%s1744_s5 + $0xe1] sm:$0xff]  ;;  %1504 = vmatpush3.msk.msra.mxu0 %vm1044_vm0, %v994_v44  ;;  %1542 = vmatpush3.msk.msra.mxu1 %vm1044_vm0, %v994_v44 }
  0x23   : > { %v1369_v13 = vld [vmem:[%s1744_s5 + $0x19] sm:$0xff]  ;;  %v1370_v17 = vld [vmem:[%s1744_s5 + $0x21] sm:$0xff]  ;;  %v1814_v27 = vld [vmem:[%s1744_s5 + $0x30] sm:$0xff] }
  0x24   : > { %v1393_v18 = vld [vmem:[%s1744_s5 + $0xda] sm:$0xff]  ;;  %v238_v22 = vld [vmem:[%s1744_s5 + $0xf2] sm:$0xff]  ;;  %v1394_v24 = vld [vmem:[%s1744_s5 + $0xe2] sm:$0xff] }
  0x25   : > { %438 = vrot.lane.b32.xlu1 %v1761_v4, %s1657_s7  ;;  %422 = vrot.lane.b32.xlu0 %v228_v5, %s1657_s7  ;;  %v1385_v19 = vld [vmem:[%s1744_s5 + $0x1a] sm:$0xff]  ;;  %v230_v23 = vld [vmem:[%s1744_s5 + $0x32] sm:$0xff] }
  0x26   : > { %v223_v20 = vld [vmem:[%s1744_s5 + $0xf9] sm:$0xff]  ;;  %v1386_v25 = vld [vmem:[%s1744_s5 + $0x22] sm:$0xff]  ;;  %v1364_v34 = vld [vmem:[%s1744_s5 + $0x110] sm:$0xff] }
  0x27   : > { %v215_v21 = vld [vmem:[%s1744_s5 + $0x39] sm:$0xff]  ;;  %v1363_v30 = vld [vmem:[%s1744_s5 + $0x108] sm:$0xff]  ;;  %v1356_v35 = vld [vmem:[%s1744_s5 + $0x50] sm:$0xff] }
  0x28   : > { %v239_v28 = vld [vmem:[%s1744_s5 + $0xfa] sm:$0xff]  ;;  %v1355_v31 = vld [vmem:[%s1744_s5 + $0x48] sm:$0xff]  ;;  %v1380_v47 = vld [vmem:[%s1744_s5 + $0x111] sm:$0xff] }
  0x29   : > { %440 = vrot.lane.b32.xlu1 %v1768_v6, %s1657_s7  ;;  %424 = vrot.lane.b32.xlu0 %v229_v7, %s1657_s7  ;;  %v231_v29 = vld [vmem:[%s1744_s5 + $0x3a] sm:$0xff]  ;;  %v1379_v36 = vld [vmem:[%s1744_s5 + $0x109] sm:$0xff] }
  0x2a   : > { %v1829_v32 = vld [vmem:[%s1744_s5 + $0xf8] sm:$0xff]  ;;  %v1371_v37 = vld [vmem:[%s1744_s5 + $0x49] sm:$0xff]  ;;  %v224_v45 = vld [vmem:[%s1744_s5 + $0x121] sm:$0xff] }
  0x2b   : > { %v1832_v33 = vld [vmem:[%s1744_s5 + $0x38] sm:$0xff]  ;;  %v216_v46 = vld [vmem:[%s1744_s5 + $0x61] sm:$0xff]  ;;  %v1395_v49 = vld [vmem:[%s1744_s5 + $0x10a] sm:$0xff] }
  0x2c   : > { %v1372_v48 = vld [vmem:[%s1744_s5 + $0x51] sm:$0xff]  ;;  %v225_v51 = vld [vmem:[%s1744_s5 + $0x129] sm:$0xff]  ;;  %v1894_v57 = vld [vmem:[%s1744_s5 + $0x120] sm:$0xff] }
  0x2d   : > { %502 = vrot.lane.b32.xlu1 %v1361_v8, %s1658_s8  ;;  %486 = vrot.lane.b32.xlu0 %v1353_v9, %s1658_s8  ;;  %v1387_v50 = vld [vmem:[%s1744_s5 + $0x4a] sm:$0xff]  ;;  %v240_v53 = vld [vmem:[%s1744_s5 + $0x122] sm:$0xff] }
  0x2e   : > { %v217_v52 = vld [vmem:[%s1744_s5 + $0x69] sm:$0xff]  ;;  %v1396_v55 = vld [vmem:[%s1744_s5 + $0x112] sm:$0xff]  ;;  %v1897_v58 = vld [vmem:[%s1744_s5 + $0x60] sm:$0xff] }
  0x2f   : > { %v232_v54 = vld [vmem:[%s1744_s5 + $0x62] sm:$0xff]  ;;  %v1388_v56 = vld [vmem:[%s1744_s5 + $0x52] sm:$0xff]  ;;  %v241_v61 = vld [vmem:[%s1744_s5 + $0x12a] sm:$0xff] }
  0x30   : > { %v233_v62 = vld [vmem:[%s1744_s5 + $0x6a] sm:$0xff]  ;;  %v1365_v1 = vld [vmem:[%s1744_s5 + $0x138] sm:$0xff] }
  0x31   : > { %504 = vrot.lane.b32.xlu1 %v1362_v10, %s1658_s8  ;;  %488 = vrot.lane.b32.xlu0 %v1354_v11, %s1658_s8  ;;  %v1357_v5 = vld [vmem:[%s1744_s5 + $0x78] sm:$0xff]  ;;  %v1924_v9 = vld [vmem:[%s1744_s5 + $0x128] sm:$0xff] }
  0x32   : > { %v1927_v10 = vld [vmem:[%s1744_s5 + $0x68] sm:$0xff]  ;;  %v1397_v39 = vld [vmem:[%s1744_s5 + $0x13a] sm:$0xff] }
  0x33   : > { %v1389_v40 = vld [vmem:[%s1744_s5 + $0x7a] sm:$0xff] }
  0x34   : > { %v2080_v2 = vld [vmem:[%s1744_s5 + $0x158] sm:$0xff] }
  0x35   : > { %566 = vrot.lane.b32.xlu1 %v1377_v12, %s1659_s9  ;;  %550 = vrot.lane.b32.xlu0 %v1369_v13, %s1659_s9  ;;  %v2083_v3 = vld [vmem:[%s1744_s5 + $0x98] sm:$0xff] }
  0x39   : > { %378 = vrot.lane.b32.xlu1 %v222_v14, %s1656_s6  ;;  %362 = vrot.lane.b32.xlu0 %v214_v15, %s1656_s6 }
  0x3d   : > { %568 = vrot.lane.b32.xlu1 %v1378_v16, %s1659_s9  ;;  %552 = vrot.lane.b32.xlu0 %v1370_v17, %s1659_s9  ;;  %v1358_v16 = vld [vmem:[%s1744_s5 + $0x80] sm:$0xff] }
  0x41   : > { %630 = vrot.lane.b32.xlu1 %v1393_v18, %s1660_s10  ;;  %614 = vrot.lane.b32.xlu0 %v1385_v19, %s1660_s10  ;;  %v1381_v19 = vld [vmem:[%s1744_s5 + $0x139] sm:$0xff] }
  0x45   : > { %380 = vrot.lane.b32.xlu1 %v223_v20, %s1656_s6  ;;  %364 = vrot.lane.b32.xlu0 %v215_v21, %s1656_s6 }
  0x49   : > { %442 = vrot.lane.b32.xlu1 %v238_v22, %s1657_s7  ;;  %426 = vrot.lane.b32.xlu0 %v230_v23, %s1657_s7 }
  0x4d   : > { %632 = vrot.lane.b32.xlu1 %v1394_v24, %s1660_s10  ;;  %616 = vrot.lane.b32.xlu0 %v1386_v25, %s1660_s10 }
  0x51   : > { %694 = vrot.lane.b32.xlu1 %v1811_v26, %s1661_s11  ;;  %678 = vrot.lane.b32.xlu0 %v1814_v27, %s1661_s11 }
  0x55   : > { %444 = vrot.lane.b32.xlu1 %v239_v28, %s1657_s7  ;;  %428 = vrot.lane.b32.xlu0 %v231_v29, %s1657_s7 }
  0x59   : > { %506 = vrot.lane.b32.xlu1 %v1363_v30, %s1658_s8  ;;  %490 = vrot.lane.b32.xlu0 %v1355_v31, %s1658_s8  ;;  %v1975_v30 = vld [vmem:[%s1744_s5 + $0x91] sm:$0xff] }
  0x5d   : > { %696 = vrot.lane.b32.xlu1 %v1829_v32, %s1661_s11  ;;  %680 = vrot.lane.b32.xlu0 %v1832_v33, %s1661_s11 }
  0x61   : > { %758 = vrot.lane.b32.xlu1 %v222_v14, %s1662_s12  ;;  %742 = vrot.lane.b32.xlu0 %v214_v15, %s1662_s12  ;;  %v1366_v15 = vld [vmem:[%s1744_s5 + $0x140] sm:$0xff] }
  0x65   : > { %508 = vrot.lane.b32.xlu1 %v1364_v34, %s1658_s8  ;;  %492 = vrot.lane.b32.xlu0 %v1356_v35, %s1658_s8  ;;  %v1382_v35 = vld [vmem:[%s1744_s5 + $0x141] sm:$0xff] }
  0x69   : > { %570 = vrot.lane.b32.xlu1 %v1379_v36, %s1659_s9  ;;  %554 = vrot.lane.b32.xlu0 %v1371_v37, %s1659_s9  ;;  %v1374_v36 = vld [vmem:[%s1744_s5 + $0x81] sm:$0xff] }
  0x6d   : > { %760 = vrot.lane.b32.xlu1 %v223_v20, %s1662_s12  ;;  %744 = vrot.lane.b32.xlu0 %v215_v21, %s1662_s12  ;;  %v1373_v20 = vld [vmem:[%s1744_s5 + $0x79] sm:$0xff] }
  0x71   : > { %822 = vrot.lane.b32.xlu1 %v238_v22, %s1663_s30  ;;  %806 = vrot.lane.b32.xlu0 %v230_v23, %s1663_s30 }
  0x75   : > { %382 = vrot.lane.b32.xlu1 %v224_v45, %s1656_s6  ;;  %366 = vrot.lane.b32.xlu0 %v216_v46, %s1656_s6 }
  0x79   : > { %572 = vrot.lane.b32.xlu1 %v1380_v47, %s1659_s9  ;;  %556 = vrot.lane.b32.xlu0 %v1372_v48, %s1659_s9 }
  0x7d   : > { %634 = vrot.lane.b32.xlu1 %v1395_v49, %s1660_s10  ;;  %618 = vrot.lane.b32.xlu0 %v1387_v50, %s1660_s10  ;;  %v2018_v49 = vld [vmem:[%s1744_s5 + $0x152] sm:$0xff] }
  0x7e   : > { %v2021_v50 = vld [vmem:[%s1744_s5 + $0x92] sm:$0xff] }
  0x81   : > { %824 = vrot.lane.b32.xlu1 %v239_v28, %s1663_s30  ;;  %808 = vrot.lane.b32.xlu0 %v231_v29, %s1663_s30  ;;  %v1972_v29 = vld [vmem:[%s1744_s5 + $0x151] sm:$0xff] }
  0x85   : > { %384 = vrot.lane.b32.xlu1 %v225_v51, %s1656_s6  ;;  %368 = vrot.lane.b32.xlu0 %v217_v52, %s1656_s6 }
  0x89   : > { %446 = vrot.lane.b32.xlu1 %v240_v53, %s1657_s7  ;;  %430 = vrot.lane.b32.xlu0 %v232_v54, %s1657_s7 }
  0x8d   : > { %636 = vrot.lane.b32.xlu1 %v1396_v55, %s1660_s10  ;;  %620 = vrot.lane.b32.xlu0 %v1388_v56, %s1660_s10 }
  0x8f   : > { %v1899_v59 = vpop.permute.xlu1 %360  ;;  %v1901_v60 = vpop.permute.xlu0 %358 }
  0x91   : > { %698 = vrot.lane.b32.xlu1 %v1894_v57, %s1661_s11  ;;  %682 = vrot.lane.b32.xlu0 %v1897_v58, %s1661_s11 }
  0x93   : > { %v1909_v63 = vpop.permute.xlu1 %376  ;;  %v1911_v0 = vpop.permute.xlu0 %374 }
  0x95   : > { %448 = vrot.lane.b32.xlu1 %v241_v61, %s1657_s7  ;;  %432 = vrot.lane.b32.xlu0 %v233_v62, %s1657_s7 }
  0x97   : > { %v1917_v7 = vpop.permute.xlu1 %438  ;;  %v1919_v8 = vpop.permute.xlu0 %422 }
  0x99   : > { %510 = vrot.lane.b32.xlu1 %v1365_v1, %s1658_s8  ;;  %494 = vrot.lane.b32.xlu0 %v1357_v5, %s1658_s8 }
  0x9b   : > { %v1929_v11 = vpop.permute.xlu1 %440  ;;  %v1931_v12 = vpop.permute.xlu0 %424 }
  0x9d   : > { %700 = vrot.lane.b32.xlu1 %v1924_v9, %s1661_s11  ;;  %684 = vrot.lane.b32.xlu0 %v1927_v10, %s1661_s11 }
  0x9f   : > { %v1937_v13 = vpop.permute.xlu1 %502  ;;  %v1939_v14 = vpop.permute.xlu0 %486 }
  0xa1   : > { %762 = vrot.lane.b32.xlu1 %v224_v45, %s1662_s12  ;;  %746 = vrot.lane.b32.xlu0 %v216_v46, %s1662_s12  ;;  %v2004_v45 = vld [vmem:[%s1744_s5 + $0x159] sm:$0xff] }
  0xa2   : > { %v2007_v46 = vld [vmem:[%s1744_s5 + $0x99] sm:$0xff] }
  0xa3   : > { %v1945_v17 = vpop.permute.xlu1 %504  ;;  %v1947_v18 = vpop.permute.xlu0 %488 }
  0xa5   : > { %512 = vrot.lane.b32.xlu1 %v1366_v15, %s1658_s8  ;;  %496 = vrot.lane.b32.xlu0 %v1358_v16, %s1658_s8  ;;  %v2050_v15 = vld [vmem:[%s1744_s5 + $0x15a] sm:$0xff] }
  0xa6   : > { %v2053_v16 = vld [vmem:[%s1744_s5 + $0x9a] sm:$0xff] }
  0xa7   : > { %v1953_v21 = vpop.permute.xlu1 %566  ;;  %v1955_v22 = vpop.permute.xlu0 %550 }
  0xa9   : > { %574 = vrot.lane.b32.xlu1 %v1381_v19, %s1659_s9  ;;  %558 = vrot.lane.b32.xlu0 %v1373_v20, %s1659_s9 }
  0xab   : > { %v1959_v23 = vpop.permute.xlu1 %378  ;;  %v1961_v24 = vpop.permute.xlu0 %362 }
  0xad   : > { %764 = vrot.lane.b32.xlu1 %v225_v51, %s1662_s12  ;;  %748 = vrot.lane.b32.xlu0 %v217_v52, %s1662_s12 }
  0xaf   : > { %v1965_v25 = vpop.permute.xlu1 %568  ;;  %v1967_v28 = vpop.permute.xlu0 %552 }
  0xb1   : > { %826 = vrot.lane.b32.xlu1 %v240_v53, %s1663_s30  ;;  %810 = vrot.lane.b32.xlu0 %v232_v54, %s1663_s30  ;;  %v1398_v53 = vld [vmem:[%s1744_s5 + $0x142] sm:$0xff] }
  0xb2   : > { %v1390_v54 = vld [vmem:[%s1744_s5 + $0x82] sm:$0xff] }
  0xb3   : > { %v1977_v31 = vpop.permute.xlu1 %630  ;;  %v1979_v34 = vpop.permute.xlu0 %614 }
  0xb5   : > { %386 = vrot.lane.b32.xlu1 %v1972_v29, %s1656_s6  ;;  %370 = vrot.lane.b32.xlu0 %v1975_v30, %s1656_s6 }
  0xb7   : > { %v1987_v37 = vpop.permute.xlu1 %380  ;;  %v1989_v38 = vpop.permute.xlu0 %364 }
  0xb9   : > { %576 = vrot.lane.b32.xlu1 %v1382_v35, %s1659_s9  ;;  %560 = vrot.lane.b32.xlu0 %v1374_v36, %s1659_s9  ;;  %v1367_v35 = vld [vmem:[%s1744_s5 + $0x168] sm:$0xff] }
  0xba   : > { %v1359_v36 = vld [vmem:[%s1744_s5 + $0xa8] sm:$0xff] }
  0xbb   : > { %v443_v41 = vpop.permute.xlu1 %442  ;;  %v427_v42 = vpop.permute.xlu0 %426 }
  0xbd   : > { %638 = vrot.lane.b32.xlu1 %v1397_v39, %s1660_s10  ;;  %622 = vrot.lane.b32.xlu0 %v1389_v40, %s1660_s10 }
  0xbf   : > { %v1997_v43 = vpop.permute.xlu1 %632  ;;  %v1999_v44 = vpop.permute.xlu0 %616 }
  0xc1   : > { %828 = vrot.lane.b32.xlu1 %v241_v61, %s1663_s30  ;;  %812 = vrot.lane.b32.xlu0 %v233_v62, %s1663_s30  ;;  %v2036_v61 = vld [vmem:[%s1744_s5 + $0x150] sm:$0xff] }
  0xc2   : > { %2510 = vst [vmem:[#allocation9_spill] sm:$0xff] %v2036_v61  ;;  %v2039_v62 = vld [vmem:[%s1744_s5 + $0x90] sm:$0xff] }
  0xc3   : > { %v2009_v47 = vpop.permute.xlu1 %694  ;;  %v2011_v48 = vpop.permute.xlu0 %678  ;;  %2511 = vst [vmem:[#allocation10_spill] sm:$0xff] %v2039_v62 }
  0xc5   : > { %388 = vrot.lane.b32.xlu1 %v2004_v45, %s1656_s6  ;;  %372 = vrot.lane.b32.xlu0 %v2007_v46, %s1656_s6 }
  0xc7   : > { %v2023_v51 = vpop.permute.xlu1 %444  ;;  %v2025_v52 = vpop.permute.xlu0 %428 }
  0xc9   : > { %450 = vrot.lane.b32.xlu1 %v2018_v49, %s1657_s7  ;;  %434 = vrot.lane.b32.xlu0 %v2021_v50, %s1657_s7 }
  0xcb   : > { %v507_v55 = vpop.permute.xlu1 %506  ;;  %v491_v56 = vpop.permute.xlu0 %490 }
  0xcd   : > { %640 = vrot.lane.b32.xlu1 %v1398_v53, %s1660_s10  ;;  %624 = vrot.lane.b32.xlu0 %v1390_v54, %s1660_s10  ;;  %v196_v53 = vld [vmem:[%s1744_s5] sm:$0xff]  ;;  %v865_v54 = vsel %vm854_vm1, %v1811_v26, %v1959_v23 }
  0xce   : > { %v882_v6 = vsel %vm871_vm2, %v865_v54, %v443_v41  ;;  %v855_v41 = vsel %vm854_vm1, %v196_v53, %v1901_v60 }
  0xcf   : > { %v2041_v1 = vpop.permute.xlu1 %696  ;;  %v2043_v5 = vpop.permute.xlu0 %680  ;;  %v899_v26 = vsel %vm888_vm3, %v882_v6, %v507_v55  ;;  %v872_v6 = vsel %vm871_vm2, %v855_v41, %v1919_v8  ;;  %v2152_v41 = vld [vmem:[%s1744_s5 + $0xc8] sm:$0xff] }
  0xd1   : > { %702 = vrot.lane.b32.xlu1 %v2036_v61, %s1661_s11  ;;  %686 = vrot.lane.b32.xlu0 %v2039_v62, %s1661_s11  ;;  %v857_v62 = vsel %vm854_vm1, %v1814_v27, %v1961_v24  ;;  %v2075_v61 = vld [vmem:[%s1744_s5 + $0xc0] sm:$0xff] }
  0xd2   : > { %v874_v4 = vsel %vm871_vm2, %v857_v62, %v427_v42  ;;  %v863_v42 = vsel %vm854_vm1, %v2075_v61, %v1911_v0  ;;  %v889_v0 = vsel %vm888_vm3, %v872_v6, %v1939_v14 }
  0xd3   : > { %v759_v19 = vpop.permute.xlu1 %758  ;;  %v743_v20 = vpop.permute.xlu0 %742  ;;  %v891_v27 = vsel %vm888_vm3, %v874_v4, %v491_v56  ;;  %v880_v4 = vsel %vm871_vm2, %v863_v42, %v1917_v7  ;;  %v906_v8 = vsel %vm905_vm4, %v889_v0, %v1955_v22  ;;  %v1368_v22 = vld [vmem:[%s1744_s5 + $0x170] sm:$0xff] }
  0xd4   : > { %v897_v60 = vsel %vm888_vm3, %v880_v4, %v1937_v13  ;;  %v923_v13 = vsel %vm922_vm5, %v906_v8, %v1979_v34 }
  0xd5   : > { %452 = vrot.lane.b32.xlu1 %v2050_v15, %s1657_s7  ;;  %436 = vrot.lane.b32.xlu0 %v2053_v16, %s1657_s7  ;;  %v914_v7 = vsel %vm905_vm4, %v897_v60, %v1953_v21  ;;  %v940_v21 = vsel %vm939_vm6, %v923_v13, %v2011_v48  ;;  %v1375_v48 = vld [vmem:[%s1744_s5 + $0xa9] sm:$0xff] }
  0xd6   : > { %v931_v62 = vsel %vm922_vm5, %v914_v7, %v1977_v31  ;;  %v1360_v31 = vld [vmem:[%s1744_s5 + $0xb0] sm:$0xff]  ;;  %v957_v34 = vsel %vm956_vm7, %v940_v21, %v743_v20 }
  0xd7   : > { %v2061_v39 = vpop.permute.xlu1 %508  ;;  %v2063_v40 = vpop.permute.xlu0 %492  ;;  %v948_v14 = vsel %vm939_vm6, %v931_v62, %v2009_v47  ;;  %v1383_v47 = vld [vmem:[%s1744_s5 + $0x169] sm:$0xff] }
  0xd8   : > { %v965_v53 = vsel %vm956_vm7, %v948_v14, %v759_v19 }
  0xd9   : > { %514 = vrot.lane.b32.xlu1 %v1367_v35, %s1658_s8  ;;  %498 = vrot.lane.b32.xlu0 %v1359_v36, %s1658_s8 }
  0xdb   : > { %v571_v23 = vpop.permute.xlu1 %570  ;;  %v555_v24 = vpop.permute.xlu0 %554 }
  0xdc   : > { %v2088_v35 = vsel %vm905_vm4, %v899_v26, %v571_v23  ;;  %v2091_v36 = vsel %vm905_vm4, %v891_v27, %v555_v24  ;;  %v866_v27 = vsel %vm854_vm1, %v1829_v32, %v1987_v37  ;;  %v858_v23 = vsel %vm854_vm1, %v1832_v33, %v1989_v38  ;;  %v197_v24 = vld [vmem:[%s1744_s5 + $0x8] sm:$0xff] }
  0xdd   : > { %704 = vrot.lane.b32.xlu1 %v2080_v2, %s1661_s11  ;;  %688 = vrot.lane.b32.xlu0 %v2083_v3, %s1661_s11  ;;  %v883_v42 = vsel %vm871_vm2, %v866_v27, %v2023_v51  ;;  %v875_v4 = vsel %vm871_vm2, %v858_v23, %v2025_v52  ;;  %v856_v51 = vsel %vm854_vm1, %v197_v24, %v1899_v59 }
  0xde   : > { %v900_v32 = vsel %vm888_vm3, %v883_v42, %v2061_v39  ;;  %v892_v37 = vsel %vm888_vm3, %v875_v4, %v2063_v40  ;;  %v864_v52 = vsel %vm854_vm1, %v2152_v41, %v1909_v63  ;;  %v873_v40 = vsel %vm871_vm2, %v856_v51, %v1931_v12  ;;  %v2512_v42 = vld [vmem:[#allocation6_spill] sm:$0xff] }
  0xdf   : > { %v2110_v55 = vpop.permute.xlu1 %760  ;;  %v2112_v56 = vpop.permute.xlu0 %744  ;;  %v881_v39 = vsel %vm871_vm2, %v864_v52, %v1929_v11  ;;  %v890_v63 = vsel %vm888_vm3, %v873_v40, %v1947_v18  ;;  %v1432_v4 = vld [vmem:[%s1744_s5 + $0x189] sm:$0xff] }
  0xe0   : > { %v898_v59 = vsel %vm888_vm3, %v881_v39, %v1945_v17  ;;  %v907_v7 = vsel %vm905_vm4, %v890_v63, %v1967_v28  ;;  %v1376_v28 = vld [vmem:[%s1744_s5 + $0xb1] sm:$0xff] }
  0xe1   : > { %766 = vrot.lane.b32.xlu1 %v1972_v29, %s1662_s12  ;;  %750 = vrot.lane.b32.xlu0 %v1975_v30, %s1662_s12  ;;  %v924_v12 = vsel %vm922_vm5, %v907_v7, %v1999_v44  ;;  %v2514_v52 = vld [vmem:[#allocation7_spill] sm:$0xff]  ;;  %v2515_v7 = vld [vmem:[#allocation8_spill] sm:$0xff] }
  0xe2   : > { %v941_v18 = vsel %vm939_vm6, %v924_v12, %v2043_v5  ;;  %v1391_v5 = vld [vmem:[%s1744_s5 + $0xaa] sm:$0xff] }
  0xe3   : > { %v823_v54 = vpop.permute.xlu1 %822  ;;  %v807_v29 = vpop.permute.xlu0 %806  ;;  %v958_v44 = vsel %vm956_vm7, %v941_v18, %v2112_v56  ;;  %v1448_v39 = vld [vmem:[%s1744_s5 + $0x18a] sm:$0xff] }
  0xe4   : > { %v974_v30 = vsel %vm973_vm8, %v957_v34, %v807_v29  ;;  %v982_v26 = vsel %vm973_vm8, %v965_v53, %v823_v54  ;;  %v1400_v34 = vld [vmem:[%s1744_s5 + $0x172] sm:$0xff] }
  0xe5   : > { %516 = vrot.lane.b32.xlu1 %v1368_v22, %s1658_s8  ;;  %500 = vrot.lane.b32.xlu0 %v1360_v31, %s1658_s8  ;;  %v1392_v54 = vld [vmem:[%s1744_s5 + $0xb2] sm:$0xff] }
  0xe6   : > { %1505 = vmatprep.mubr.msk.f32.mxu0 %vm995_vm9, %v974_v30  ;;  %1517 = vmatprep.mubr.msk.f32.mxu1 %vm995_vm9, %v982_v26 }
  0xe7   : > { %v383_v19 = vpop.permute.xlu1 %382  ;;  %v367_v20 = vpop.permute.xlu0 %366 }
  0xe8   : > { %v867_v13 = vsel %vm854_vm1, %v1894_v57, %v383_v19  ;;  %v859_v14 = vsel %vm854_vm1, %v1897_v58, %v367_v20  ;;  %v1415_v58 = vld [vmem:[%s1744_s5 + $0x180] sm:$0xff] }
  0xe9   : > { %578 = vrot.lane.b32.xlu1 %v1383_v47, %s1659_s9  ;;  %562 = vrot.lane.b32.xlu0 %v1375_v48, %s1659_s9 }
  0xeb   : > { %v573_v33 = vpop.permute.xlu1 %572  ;;  %v557_v38 = vpop.permute.xlu0 %556 }
  0xec   : > { %v2163_v6 = vsel %vm905_vm4, %v900_v32, %v573_v33  ;;  %v2166_v60 = vsel %vm905_vm4, %v892_v37, %v557_v38  ;;  %v1447_v33 = vld [vmem:[%s1744_s5 + $0x182] sm:$0xff] }
  0xed   : > { %768 = vrot.lane.b32.xlu1 %v2004_v45, %s1662_s12  ;;  %752 = vrot.lane.b32.xlu0 %v2007_v46, %s1662_s12  ;;  %v915_v46 = vsel %vm905_vm4, %v898_v59, %v1965_v25  ;;  %v1384_v25 = vld [vmem:[%s1744_s5 + $0x171] sm:$0xff] }
  0xee   : > { %v932_v11 = vsel %vm922_vm5, %v915_v46, %v1997_v43 }
  0xef   : > { %v2185_v0 = vpop.permute.xlu1 %634  ;;  %v2187_v45 = vpop.permute.xlu0 %618  ;;  %v949_v17 = vsel %vm939_vm6, %v932_v11, %v2041_v1  ;;  %v1399_v1 = vld [vmem:[%s1744_s5 + $0x16a] sm:$0xff] }
  0xf0   : > { %v966_v43 = vsel %vm956_vm7, %v949_v17, %v2110_v55 }
  0xf1   : > { %830 = vrot.lane.b32.xlu1 %v2018_v49, %s1663_s30  ;;  %814 = vrot.lane.b32.xlu0 %v2021_v50, %s1663_s30 }
  0xf3   : > { %v825_v49 = vpop.permute.xlu1 %824  ;;  %v809_v8 = vpop.permute.xlu0 %808 }
  0xf4   : > { %v983_v62 = vsel %vm973_vm8, %v966_v43, %v825_v49  ;;  %v975_v50 = vsel %vm973_vm8, %v958_v44, %v809_v8  ;;  %v933_v43 = vsel %vm922_vm5, %v2088_v35, %v2185_v0  ;;  %v925_v44 = vsel %vm922_vm5, %v2091_v36, %v2187_v45 }
  0xf5   : > { %580 = vrot.lane.b32.xlu1 %v1384_v25, %s1659_s9  ;;  %564 = vrot.lane.b32.xlu0 %v1376_v28, %s1659_s9 }
  0xf6   : > { %1506 = vmatmul.mubr.msk.f32.vlgmr.msra.gmra.mrb[0].mxu0 %vm995_vm9, %v975_v50  ;;  %1518 = vmatmul.mubr.msk.f32.vlgmr.msra.gmra.mrb[0].mxu1 %vm995_vm9, %v983_v62 }
  0xf7   : > { %v385_v55 = vpop.permute.xlu1 %384  ;;  %v369_v56 = vpop.permute.xlu0 %368 }
  0xf8   : > { %v860_v47 = vsel %vm854_vm1, %v1927_v10, %v369_v56 }
  0xf9   : > { %642 = vrot.lane.b32.xlu1 %v1399_v1, %s1660_s10  ;;  %626 = vrot.lane.b32.xlu0 %v1391_v5, %s1660_s10 }
  0xfb   : > { %v447_v21 = vpop.permute.xlu1 %446  ;;  %v431_v22 = vpop.permute.xlu0 %430 }
  0xfc   : > { %v884_v31 = vsel %vm871_vm2, %v867_v13, %v447_v21  ;;  %v876_v53 = vsel %vm871_vm2, %v859_v14, %v431_v22 }
  0xfd   : > { %832 = vrot.lane.b32.xlu1 %v2050_v15, %s1663_s30  ;;  %816 = vrot.lane.b32.xlu0 %v2053_v16, %s1663_s30  ;;  %v1416_v15 = vld [vmem:[%s1744_s5 + $0x188] sm:$0xff]  ;;  %v868_v16 = vsel %vm854_vm1, %v1924_v9, %v385_v55 }
  0xff   : > { %v2233_v29 = vpop.permute.xlu1 %636  ;;  %v2235_v57 = vpop.permute.xlu0 %620 }
 0x101   : > { %644 = vrot.lane.b32.xlu1 %v1400_v34, %s1660_s10  ;;  %628 = vrot.lane.b32.xlu0 %v1392_v54, %s1660_s10 }
 0x103   : > { %v699_v30 = vpop.permute.xlu1 %698  ;;  %v683_v26 = vpop.permute.xlu0 %682 }
 0x104   : > { %v950_v49 = vsel %vm939_vm6, %v933_v43, %v699_v30  ;;  %v942_v8 = vsel %vm939_vm6, %v925_v44, %v683_v26 }
 0x105   : > { %706 = vrot.lane.b32.xlu1 %v1415_v58, %s1661_s11  ;;  %690 = vrot.lane.b32.xlu0 %v2075_v61, %s1661_s11  ;;  %v1431_v61 = vld [vmem:[%s1744_s5 + $0x181] sm:$0xff]  ;;  %s188_s5 = sand.u32 1, %s1646_s16  }
 0x106   : > { %s2451_s19 = scalar_lea.sflag [#allocation3], %s188_s5 }
 0x107   : > { %v449_v48 = vpop.permute.xlu1 %448  ;;  %v433_v19 = vpop.permute.xlu0 %432 }
 0x108   : > { %v885_v20 = vsel %vm871_vm2, %v868_v16, %v449_v48  ;;  %v877_v27 = vsel %vm871_vm2, %v860_v47, %v433_v19  ;;  %v2517_v48 = vld [vmem:[#allocation10_spill] sm:$0xff] }
 0x109   : > { %708 = vrot.lane.b32.xlu1 %v1416_v15, %s1661_s11  ;;  %692 = vrot.lane.b32.xlu0 %v2152_v41, %s1661_s11  ;;  %v2513_v41 = vld [vmem:[#allocation5_spill] sm:$0xff]  ;;  %s1351_s11 = sshll.u32 %s188_s5, 7 }
 0x10b   : > { %v511_v23 = vpop.permute.xlu1 %510  ;;  %v495_v24 = vpop.permute.xlu0 %494 }
 0x10c   : > { %v901_v9 = vsel %vm888_vm3, %v884_v31, %v511_v23  ;;  %v893_v10 = vsel %vm888_vm3, %v876_v53, %v495_v24  ;;  %v934_v31 = vsel %vm922_vm5, %v2163_v6, %v2233_v29  ;;  %v926_v53 = vsel %vm922_vm5, %v2166_v60, %v2235_v57  ;;  %v2516_v29 = vld [vmem:[#allocation9_spill] sm:$0xff] }
 0x10d   : > { %770 = vrot.lane.b32.xlu1 %v1431_v61, %s1662_s12  ;;  %754 = vrot.lane.b32.xlu0 %v2512_v42, %s1662_s12 }
 0x10f   : > { %v701_v32 = vpop.permute.xlu1 %700  ;;  %v685_v37 = vpop.permute.xlu0 %684 }
 0x110   : > { %v951_v34 = vsel %vm939_vm6, %v934_v31, %v701_v32  ;;  %v943_v54 = vsel %vm939_vm6, %v926_v53, %v685_v37 }
 0x111   : > { %772 = vrot.lane.b32.xlu1 %v1432_v4, %s1662_s12  ;;  %756 = vrot.lane.b32.xlu0 %v2513_v41, %s1662_s12  ;;  %s2398_s12 = scalar_lea.vmem [#allocation2], %s1351_s11 }
 0x112   : > { %s1285_s22 = sshll.u32 %s2398_s12, 4  ;;  %s2443_s22 = int_to_ptr.vmem [resolvable:$true] %s1285_s22 }
 0x113   : > { %v763_v38 = vpop.permute.xlu1 %762  ;;  %v747_v51 = vpop.permute.xlu0 %746  ;;  %s1592_s29 = scalar_lea.vmem %s2443_s22, 2048 }
 0x114   : > { %v967_v62 = vsel %vm956_vm7, %v950_v49, %v763_v38  ;;  %v959_v50 = vsel %vm956_vm7, %v942_v8, %v747_v51  ;;  %p1593_p11 = scmp.ne.s32.totalorder %s2443_s22, %s1592_s29 }
 0x115   : > { %834 = vrot.lane.b32.xlu1 %v1447_v33, %s1663_s30  ;;  %818 = vrot.lane.b32.xlu0 %v2514_v52, %s1663_s30 }
 0x116   : > { %p1594_p12 = pnand %p1593_p11, %p1729_p5 }
 0x117   : > { %v513_v40 = vpop.permute.xlu1 %512  ;;  %v497_v59 = vpop.permute.xlu0 %496 }
 0x118   : > { %v902_v63 = vsel %vm888_vm3, %v885_v20, %v513_v40  ;;  %v894_v46 = vsel %vm888_vm3, %v877_v27, %v497_v59  ;;  %p1595_p13 = pneg %p1594_p12 }
 0x119   : > { %836 = vrot.lane.b32.xlu1 %v1448_v39, %s1663_s30  ;;  %820 = vrot.lane.b32.xlu0 %v2515_v7, %s1663_s30  ;;  %s1664_s30 = smov [#allocation2]  }
 0x11a   : > { %s1596_s13 = sshll.u32 %s1664_s30, 4  ;;  %s1597_s13 = int_to_ptr.vmem [resolvable:$false] %s1596_s13 }
 0x11b   : > { %v575_v11 = vpop.permute.xlu1 %574  ;;  %v559_v12 = vpop.permute.xlu0 %558  ;;  %s1598_s14 = scalar_lea.vmem %s1597_s13, 4096  ;;  %p1599_p0 = scmp.lt.s32.totalorder %s2443_s22, %s1597_s13 }
 0x11c   : > { %v2274_v17 = vsel %vm905_vm4, %v901_v9, %v575_v11  ;;  %v2277_v18 = vsel %vm905_vm4, %v893_v10, %v559_v12  ;;  %p1600_p1 = scmp.lt.s32.totalorder %s1598_s14, %s1592_s29 }
 0x11e   : > { %p1601_p2 = por %p1600_p1, %p1599_p0 }
 0x11f   : > { %v765_v25 = vpop.permute.xlu1 %764  ;;  %v749_v28 = vpop.permute.xlu0 %748 }
 0x120   : > { %v968_v58 = vsel %vm956_vm7, %v951_v34, %v765_v25  ;;  %v960_v30 = vsel %vm956_vm7, %v943_v54, %v749_v28  ;;  %p1602_p3 = pnand %p1601_p2, %p1595_p13 }
 0x123   : > { %v827_v1 = vpop.permute.xlu1 %826  ;;  %v811_v5 = vpop.permute.xlu0 %810 }
 0x124   : > { %v984_v55 = vsel %vm973_vm8, %v967_v62, %v827_v1  ;;  %v976_v56 = vsel %vm973_vm8, %v959_v50, %v811_v5 }
 0x125   : > { %1508 = vmatprep.mubr.msk.f32.mxu0 %vm995_vm9, %v976_v56  ;;  %1520 = vmatprep.mubr.msk.f32.mxu1 %vm995_vm9, %v984_v55 }
 0x127   : > { %v387_v35 = vpop.permute.xlu1 %386  ;;  %v371_v36 = vpop.permute.xlu0 %370 }
 0x128   : > { %v869_v57 = vsel %vm854_vm1, %v2516_v29, %v387_v35  ;;  %v861_v19 = vsel %vm854_vm1, %v2517_v48, %v371_v36 }
 0x12b   : > { %v577_v0 = vpop.permute.xlu1 %576  ;;  %v561_v45 = vpop.permute.xlu0 %560 }
 0x12c   : > { %v919_v13 = vsel %vm905_vm4, %v902_v63, %v577_v0  ;;  %v911_v14 = vsel %vm905_vm4, %v894_v46, %v561_v45 }
 0x12f   : > { %v639_v21 = vpop.permute.xlu1 %638  ;;  %v623_v22 = vpop.permute.xlu0 %622 }
 0x130   : > { %v935_v11 = vsel %vm922_vm5, %v2274_v17, %v639_v21  ;;  %v927_v12 = vsel %vm922_vm5, %v2277_v18, %v623_v22 }
 0x133   : > { %v829_v26 = vpop.permute.xlu1 %828  ;;  %v813_v15 = vpop.permute.xlu0 %812 }
 0x134   : > { %v985_v16 = vsel %vm973_vm8, %v968_v58, %v829_v26  ;;  %v977_v47 = vsel %vm973_vm8, %v960_v30, %v813_v15 }
 0x135   : > { %1509 = vmatmul.mubr.msk.f32.gmra.mrb[2].mxu0 %vm995_vm9, %v977_v47  ;;  %1521 = vmatmul.mubr.msk.f32.gmra.mrb[2].mxu1 %vm995_vm9, %v985_v16 }
 0x137   : > { %v2309_v6 = vpop.permute.xlu1 %388  ;;  %v2311_v60 = vpop.permute.xlu0 %372 }
 0x13b   : > { %v451_v20 = vpop.permute.xlu1 %450  ;;  %v435_v27 = vpop.permute.xlu0 %434 }
 0x13c   : > { %v886_v61 = vsel %vm871_vm2, %v869_v57, %v451_v20  ;;  %v878_v23 = vsel %vm871_vm2, %v861_v19, %v435_v27  ;;  %v870_v20 = vsel %vm854_vm1, %v2080_v2, %v2309_v6  ;;  %v862_v27 = vsel %vm854_vm1, %v2083_v3, %v2311_v60 }
 0x13f   : > { %v641_v24 = vpop.permute.xlu1 %640  ;;  %v625_v9 = vpop.permute.xlu0 %624 }
 0x140   : > { %v936_v55 = vsel %vm922_vm5, %v919_v13, %v641_v24  ;;  %v928_v56 = vsel %vm922_vm5, %v911_v14, %v625_v9 }
 0x143   : > { %v703_v10 = vpop.permute.xlu1 %702  ;;  %v687_v42 = vpop.permute.xlu0 %686 }
 0x144   : > { %v952_v25 = vsel %vm939_vm6, %v935_v11, %v703_v10  ;;  %v944_v28 = vsel %vm939_vm6, %v927_v12, %v687_v42 }
 0x147   : > { %v453_v4 = vpop.permute.xlu1 %452  ;;  %v437_v32 = vpop.permute.xlu0 %436 }
 0x148   : > { %v879_v9 = vsel %vm871_vm2, %v862_v27, %v437_v32 }
 0x14b   : > { %v515_v37 = vpop.permute.xlu1 %514  ;;  %v499_v41 = vpop.permute.xlu0 %498 }
 0x14c   : > { %v903_v16 = vsel %vm888_vm3, %v886_v61, %v515_v37  ;;  %v895_v47 = vsel %vm888_vm3, %v878_v23, %v499_v41  ;;  %v887_v23 = vsel %vm871_vm2, %v870_v20, %v453_v4 }
 0x14f   : > { %v705_v33 = vpop.permute.xlu1 %704  ;;  %v689_v38 = vpop.permute.xlu0 %688 }
 0x150   : > { %v953_v35 = vsel %vm939_vm6, %v936_v55, %v705_v33  ;;  %v945_v36 = vsel %vm939_vm6, %v928_v56, %v689_v38 }
 0x153   : > { %v767_v51 = vpop.permute.xlu1 %766  ;;  %v751_v52 = vpop.permute.xlu0 %750 }
 0x154   : > { %v969_v43 = vsel %vm956_vm7, %v952_v25, %v767_v51  ;;  %v961_v44 = vsel %vm956_vm7, %v944_v28, %v751_v52  ;;  %v2381_v25 = vld [vmem:[%s2495_s2] ss:$0 sm:$0xff] }
 0x157   : > { %v517_v39 = vpop.permute.xlu1 %516  ;;  %v501_v40 = vpop.permute.xlu0 %500 }
 0x158   : > { %v904_v37 = vsel %vm888_vm3, %v887_v23, %v517_v39  ;;  %v896_v2 = vsel %vm888_vm3, %v879_v9, %v501_v40 }
 0x15b   : > { %v579_v59 = vpop.permute.xlu1 %578  ;;  %v563_v63 = vpop.permute.xlu0 %562 }
 0x15c   : > { %v920_v48 = vsel %vm905_vm4, %v903_v16, %v579_v59  ;;  %v912_v19 = vsel %vm905_vm4, %v895_v47, %v563_v63 }
 0x15f   : > { %v769_v46 = vpop.permute.xlu1 %768  ;;  %v753_v7 = vpop.permute.xlu0 %752 }
 0x160   : > { %v970_v0 = vsel %vm956_vm7, %v953_v35, %v769_v46  ;;  %v962_v45 = vsel %vm956_vm7, %v945_v36, %v753_v7 }
 0x163   : > { %v831_v49 = vpop.permute.xlu1 %830  ;;  %v815_v8 = vpop.permute.xlu0 %814 }
 0x164   : > { %v986_v62 = vsel %vm973_vm8, %v969_v43, %v831_v49  ;;  %v978_v50 = vsel %vm973_vm8, %v961_v44, %v815_v8  ;;  %v2386_v43 = vld [vmem:[%s2496_s3] ss:$0 sm:$0xff] }
 0x165   : > { %1511 = vmatprep.mubr.msk.f32.mxu0 %vm995_vm9, %v978_v50  ;;  %1523 = vmatprep.mubr.msk.f32.mxu1 %vm995_vm9, %v986_v62 }
 0x167   : > { %v581_v17 = vpop.permute.xlu1 %580  ;;  %v565_v18 = vpop.permute.xlu0 %564 }
 0x168   : > { %v921_v33 = vsel %vm905_vm4, %v904_v37, %v581_v17  ;;  %v913_v4 = vsel %vm905_vm4, %v896_v2, %v565_v18 }
 0x16b   : > { %v643_v1 = vpop.permute.xlu1 %642  ;;  %v627_v5 = vpop.permute.xlu0 %626 }
 0x16c   : > { %v937_v24 = vsel %vm922_vm5, %v920_v48, %v643_v1  ;;  %v929_v61 = vsel %vm922_vm5, %v912_v19, %v627_v5 }
 0x16f   : > { %v833_v21 = vpop.permute.xlu1 %832  ;;  %v817_v22 = vpop.permute.xlu0 %816 }
 0x170   : > { %v987_v31 = vsel %vm973_vm8, %v970_v0, %v833_v21  ;;  %v979_v53 = vsel %vm973_vm8, %v962_v45, %v817_v22 }
 0x171   : > { %1512 = vmatmul.mubr.msk.f32.gmra.mrb[4].mxu0 %vm995_vm9, %v979_v53  ;;  %1524 = vmatmul.mubr.msk.f32.gmra.mrb[4].mxu1 %vm995_vm9, %v987_v31 }
 0x173   : > { %v645_v13 = vpop.permute.xlu1 %644  ;;  %v629_v14 = vpop.permute.xlu0 %628 }
 0x174   : > { %v938_v51 = vsel %vm922_vm5, %v921_v33, %v645_v13  ;;  %v930_v52 = vsel %vm922_vm5, %v913_v4, %v629_v14 }
 0x177   : > { %v707_v34 = vpop.permute.xlu1 %706  ;;  %v691_v54 = vpop.permute.xlu0 %690 }
 0x178   : > { %v954_v10 = vsel %vm939_vm6, %v937_v24, %v707_v34  ;;  %v946_v42 = vsel %vm939_vm6, %v929_v61, %v691_v54 }
 0x17b   : > { %v709_v58 = vpop.permute.xlu1 %708  ;;  %v693_v30 = vpop.permute.xlu0 %692 }
 0x17c   : > { %v955_v39 = vsel %vm939_vm6, %v938_v51, %v709_v58  ;;  %v947_v40 = vsel %vm939_vm6, %v930_v52, %v693_v30 }
 0x17f   : > { %v771_v26 = vpop.permute.xlu1 %770  ;;  %v755_v15 = vpop.permute.xlu0 %754 }
 0x180   : > { %v971_v6 = vsel %vm956_vm7, %v954_v10, %v771_v26  ;;  %v963_v3 = vsel %vm956_vm7, %v946_v42, %v755_v15 }
 0x183   : > { %v773_v29 = vpop.permute.xlu1 %772  ;;  %v757_v57 = vpop.permute.xlu0 %756 }
 0x184   : > { %v972_v59 = vsel %vm956_vm7, %v955_v39, %v773_v29  ;;  %v964_v63 = vsel %vm956_vm7, %v947_v40, %v757_v57 }
 0x187   : > { %v835_v60 = vpop.permute.xlu1 %834  ;;  %v819_v41 = vpop.permute.xlu0 %818 }
 0x188   : > { %v988_v32 = vsel %vm973_vm8, %v971_v6, %v835_v60  ;;  %v980_v38 = vsel %vm973_vm8, %v963_v3, %v819_v41 }
 0x189   : > { %1514 = vmatprep.mubr.msk.f32.mxu0 %vm995_vm9, %v980_v38  ;;  %1526 = vmatprep.mubr.msk.f32.mxu1 %vm995_vm9, %v988_v32 }
 0x18b   : > { %v837_v46 = vpop.permute.xlu1 %836  ;;  %v821_v7 = vpop.permute.xlu0 %820 }
 0x18c   : > { %v989_v11 = vsel %vm973_vm8, %v972_v59, %v837_v46  ;;  %v981_v12 = vsel %vm973_vm8, %v964_v63, %v821_v7 }
 0x18d   : > { %1515 = vmatmul.mubr.msk.f32.gmra.mrb[6].mxu0 %vm995_vm9, %v981_v12  ;;  %1527 = vmatmul.mubr.msk.f32.gmra.mrb[6].mxu1 %vm995_vm9, %v989_v11 }
 0x1c9   : > { %v1507_v28 = vpop.f32.mrb[0].mxu0  ;;  %v1519_v44 = vpop.f32.mrb[0].mxu1 }
 0x1ca   : > { %v1201_v49 = vmul.f32 %v1507_v28, %v2381_v25  ;;  %v1209_v8 = vmul.f32 %v1519_v44, %v2381_v25  ;;  %v1114_v62 = vpop.f32.mrb[1].mxu0  ;;  %v1154_v50 = vpop.f32.mrb[1].mxu1 }
 0x1cb   : > { %v1200_v17 = vmul.f32 %v2381_v25, %v1114_v62  ;;  %v1208_v18 = vmul.f32 %v2381_v25, %v1154_v50 }
 0x1cc   : > { %v1224_v1 = vadd.f32 %v2386_v43, %v1201_v49  ;;  %v1232_v5 = vadd.f32 %v2386_v43, %v1209_v8 }
 0x1cd   : > { %v1223_v55 = vadd.f32 %v2386_v43, %v1200_v17  ;;  %v1231_v56 = vadd.f32 %v2386_v43, %v1208_v18 }
 0x1ce   : > { %v1240_v35 = vmax.f32 %v1224_v1, 0.0  ;;  %v1248_v36 = vmax.f32 %v1232_v5, 0.0 }
 0x1cf   : > { %v1239_v0 = vmax.f32 %v1223_v55, 0.0  ;;  %v1247_v45 = vmax.f32 %v1231_v56, 0.0 }
 0x1d0   : > { %1256 = vst [vmem:[%s2398_s12 + $0x8] sm:$0xff] %v1240_v35  ;;  %1264 = vst [vmem:[%s2398_s12 + $0x48] sm:$0xff] %v1248_v36 }
 0x1d1   : > { %1255 = vst [vmem:[%s2398_s12] sm:$0xff] %v1239_v0  ;;  %1263 = vst [vmem:[%s2398_s12 + $0x40] sm:$0xff] %v1247_v45 }
 0x208   : > { %v1510_v21 = vpop.f32.mrb[2].mxu0  ;;  %v1522_v22 = vpop.f32.mrb[2].mxu1 }
 0x209   : > { %v1203_v31 = vmul.f32 %v1510_v21, %v2381_v25  ;;  %v1211_v53 = vmul.f32 %v1522_v22, %v2381_v25  ;;  %v1124_v13 = vpop.f32.mrb[3].mxu0  ;;  %v1164_v14 = vpop.f32.mrb[3].mxu1 }
 0x20a   : > { %v1202_v34 = vmul.f32 %v2381_v25, %v1124_v13  ;;  %v1210_v54 = vmul.f32 %v2381_v25, %v1164_v14 }
 0x20b   : > { %v1226_v58 = vadd.f32 %v2386_v43, %v1203_v31  ;;  %v1234_v30 = vadd.f32 %v2386_v43, %v1211_v53 }
 0x20c   : > { %v1225_v26 = vadd.f32 %v2386_v43, %v1202_v34  ;;  %v1233_v15 = vadd.f32 %v2386_v43, %v1210_v54 }
 0x20d   : > { %v1242_v16 = vmax.f32 %v1226_v58, 0.0  ;;  %v1250_v47 = vmax.f32 %v1234_v30, 0.0 }
 0x20e   : > { %v1241_v29 = vmax.f32 %v1225_v26, 0.0  ;;  %v1249_v57 = vmax.f32 %v1233_v15, 0.0 }
 0x20f   : > { %1258 = vst [vmem:[%s2398_s12 + $0x18] sm:$0xff] %v1242_v16  ;;  %1266 = vst [vmem:[%s2398_s12 + $0x58] sm:$0xff] %v1250_v47 }
 0x210   : > { %1257 = vst [vmem:[%s2398_s12 + $0x10] sm:$0xff] %v1241_v29  ;;  %1265 = vst [vmem:[%s2398_s12 + $0x50] sm:$0xff] %v1249_v57 }
 0x244   : > { %v1513_v48 = vpop.f32.mrb[4].mxu0  ;;  %v1525_v19 = vpop.f32.mrb[4].mxu1 }
 0x245   : > { %v1205_v20 = vmul.f32 %v1513_v48, %v2381_v25  ;;  %v1213_v27 = vmul.f32 %v1525_v19, %v2381_v25  ;;  %v1134_v24 = vpop.f32.mrb[5].mxu0  ;;  %v1174_v61 = vpop.f32.mrb[5].mxu1 }
 0x246   : > { %v1204_v23 = vmul.f32 %v2381_v25, %v1134_v24  ;;  %v1212_v9 = vmul.f32 %v2381_v25, %v1174_v61 }
 0x247   : > { %v1228_v10 = vadd.f32 %v2386_v43, %v1205_v20  ;;  %v1236_v42 = vadd.f32 %v2386_v43, %v1213_v27 }
 0x248   : > { %v1227_v37 = vadd.f32 %v2386_v43, %v1204_v23  ;;  %v1235_v2 = vadd.f32 %v2386_v43, %v1212_v9 }
 0x249   : > { %v1244_v6 = vmax.f32 %v1228_v10, 0.0  ;;  %v1252_v3 = vmax.f32 %v1236_v42, 0.0 }
 0x24a   : > { %v1243_v60 = vmax.f32 %v1227_v37, 0.0  ;;  %v1251_v41 = vmax.f32 %v1235_v2, 0.0 }
 0x24b   : > { %1260 = vst [vmem:[%s2398_s12 + $0x28] sm:$0xff] %v1244_v6  ;;  %1268 = vst [vmem:[%s2398_s12 + $0x68] sm:$0xff] %v1252_v3 }
 0x24c   : > { %1259 = vst [vmem:[%s2398_s12 + $0x20] sm:$0xff] %v1243_v60  ;;  %1267 = vst [vmem:[%s2398_s12 + $0x60] sm:$0xff] %v1251_v41 }
 0x260   : > { %v1516_v33 = vpop.f32.mrb[6].mxu0  ;;  %v1528_v4 = vpop.f32.mrb[6].mxu1 }
 0x261   : > { %v1207_v32 = vmul.f32 %v1516_v33, %v2381_v25  ;;  %v1215_v38 = vmul.f32 %v1528_v4, %v2381_v25  ;;  %v1144_v51 = vpop.f32.mrb[7].mxu0  ;;  %v1184_v52 = vpop.f32.mrb[7].mxu1 }
 0x262   : > { %v1206_v39 = vmul.f32 %v2381_v25, %v1144_v51  ;;  %v1214_v40 = vmul.f32 %v2381_v25, %v1184_v52 }
 0x263   : > { %v1230_v59 = vadd.f32 %v2386_v43, %v1207_v32  ;;  %v1238_v63 = vadd.f32 %v2386_v43, %v1215_v38 }
 0x264   : > { %v1229_v46 = vadd.f32 %v2386_v43, %v1206_v39  ;;  %v1237_v7 = vadd.f32 %v2386_v43, %v1214_v40 }
 0x265   : > { %v1246_v11 = vmax.f32 %v1230_v59, 0.0  ;;  %v1254_v12 = vmax.f32 %v1238_v63, 0.0 }
 0x266   : > { %v1245_v25 = vmax.f32 %v1229_v46, 0.0  ;;  %v1253_v28 = vmax.f32 %v1237_v7, 0.0 }
 0x267   : > { %1262 = vst [vmem:[%s2398_s12 + $0x38] sm:$0xff] %v1246_v11  ;;  %1270 = vst [vmem:[%s2398_s12 + $0x78] sm:$0xff] %v1254_v12 }
 0x268   : > { %1261 = vst [vmem:[%s2398_s12 + $0x30] sm:$0xff] %v1245_v25  ;;  %1269 = vst [vmem:[%s2398_s12 + $0x70] sm:$0xff] %v1253_v28 }
 0x269   : > { %1605 = shalt.err (!%p1602_p3)
}
 0x26a   : > { %s1606_s5 = scalar_lea.hbm %s2441_s28, 2048  ;;  %s1610_s9 = scalar_lea.hbm %s2497_s4, 4096 }
 0x26b   : > { %p1607_p4 = scmp.ne.s32.totalorder %s2441_s28, %s1606_s5  ;;  %p1611_p9 = scmp.lt.u32.totalorder %s2441_s28, %s2497_s4 }
 0x26c   : > { %p1612_p10 = scmp.lt.u32.totalorder %s1610_s9, %s1606_s5  ;;  %p1614_p12 = scmp.lt.u32.totalorder %s1606_s5, %s2441_s28 }
 0x26d   : > { %p1608_p7 = pnand %p1607_p4, %p1729_p5 }
 0x26e   : > { %p1613_p11 = por %p1612_p10, %p1611_p9 }
 0x26f   : > { %p1609_p8 = pneg %p1608_p7 }
 0x270   : > { %p1615_p13 = por %p1614_p12, %p1613_p11 }
 0x272   : > { %p1616_p0 = pnand %p1615_p13, %p1609_p8 }
 0x274   : > { %1619 = shalt.err (!%p1616_p0)
}
 0x275   : > { %s1665_s12 = smov 128  }
 0x276   : > { %1544 = dma.vmem_to_hbm [thread:$0]  (%p1729_p5), %s2443_s22, 2048, %s2441_s28, %s2451_s19, %s1665_s12, %s1665_s12, %s1657_s7  }
 0x277 PF: > { %p1550_p1 = scmp.ge.s32.totalorder %s1654_s18, 2  ;;  %s1300_s20 = sand.u32 1, %s1642_s15  }
 0x278   : > { %s1301_s23 = scalar_lea.sflag [#allocation3], %s1300_s20 }
 0x279   : > { %p1547_p2 = pnand %p1550_p1, %p1733_p6 }
 0x27b   : > { %1637 = dma.done.wait (!%p1547_p2), %s1301_s23, 2048  }
 0x27c   : > { %1639 = vsyncadd (!%p1547_p2), %s1301_s23, 4294965248  ;;  %p14_p3 = scmp.ge.s32.totalorder %s1716_s21, 4   ;;  %s2518_s15 = smov %s1646_s16 }
 0x27d   : > { %s2519_s16 = smov %s1650_s17  ;;  %s2520_s17 = smov %s1727_s24 }
 0x27e   : > { %s2521_s18 = smov %s1716_s21  ;;  %16 = sbr.rel (!%p14_p3) target bundleno = 3 (0x3), region = 73 }
 0x285   :  { %1306 = vsyncpa [#allocation3], 1 }
 0x286   :  { %1308 = vsyncpa [#allocation3 + $0x1], 1 }

</bundles_post_ra>
